<compile_context>
chip_gen: v7x
topology: tpu7x:2x2x1
jax: 0.10.0
libtpu: 0.0.40
codegen_flags: <defaults>
</compile_context>

<pallas_src>
import jax
import jax.numpy as jnp
from jax import lax
from jax.experimental import pallas as pl
from jax.experimental.pallas import tpu as pltpu


# ---------------------------------------------------------------------------
# Kernels
# ---------------------------------------------------------------------------

def _score_epilogue(v_t, nws_ref, nbs_ref, out_ref):
    """Shared epilogue on a lane-dense (E, TB) activation.

    |v| (L1 distance), negated sum-mapping with the sign folded into (-Ws, -bs):
      -(ws . |v| + bs) == (-ws) . |v| + (-bs)
    VPU multiply + sublane reduce instead of an N=1 MXU matmul; lane-dense store.
    """
    v = jnp.abs(v_t)                                               # (E, TB)
    s = jnp.sum(v * nws_ref[...], axis=0, keepdims=True) + nbs_ref[0, 0]   # (1, TB)
    out_ref[...] = s.astype(out_ref.dtype)


def sdp_gathered_kernel(u_ref, i_ref, w1u_ref, w1i_ref, b1_ref, nws_ref,
                        nbs_ref, out_ref):
    """Fallback: u_ref / i_ref are (TB, E) row-gathered tiles (gather in XLA).

    Contract on the E axis so the MXU absorbs the transpose and v comes out
    lane-dense (E, TB):  v.T = W1u @ u.T + W1i @ i.T + b1.
    """
    dn = (((1,), (1,)), ((), ()))                                  # contract E with E
    v_t = (lax.dot_general(w1u_ref[...], u_ref[...], dn,
                           preferred_element_type=jnp.float32)
           + lax.dot_general(w1i_ref[...], i_ref[...], dn,
                             preferred_element_type=jnp.float32)
           + b1_ref[...])                                          # (E, TB)
    # TODO(synk): dropout after layer 0 is identity at inference; omitted.
    _score_epilogue(v_t, nws_ref, nbs_ref, out_ref)


def sdp_fused_kernel(uid_ref, iid_ref, utab_ref, itab_ref, w1u_ref, w1i_ref,
                     b1_ref, nws_ref, nbs_ref, out_ref):
    """Fused gather: ids in VMEM, tables VMEM-resident, gather = one-hot matmul.

    uid_ref / iid_ref: (1, TB) int32 id tiles.
    utab_ref / itab_ref: (E, n_pad) pre-transposed tables (resident across steps).
    """
    n_u = utab_ref.shape[1]
    n_i = itab_ref.shape[1]
    tb = uid_ref.shape[1]
    dt = utab_ref.dtype
    onehot_u = (lax.broadcasted_iota(jnp.int32, (n_u, tb), 0) == uid_ref[...]).astype(dt)
    onehot_i = (lax.broadcasted_iota(jnp.int32, (n_i, tb), 0) == iid_ref[...]).astype(dt)
    u_t = jnp.dot(utab_ref[...], onehot_u)                         # (E, TB) row select
    i_t = jnp.dot(itab_ref[...], onehot_i)                         # (E, TB)
    v_t = (jnp.dot(w1u_ref[...], u_t, preferred_element_type=jnp.float32)
           + jnp.dot(w1i_ref[...], i_t, preferred_element_type=jnp.float32)
           + b1_ref[...])                                          # (E, TB)
    _score_epilogue(v_t, nws_ref, nbs_ref, out_ref)


# ---------------------------------------------------------------------------
# One-time parameter preprocessing (hoisted out of the hot path)
# ---------------------------------------------------------------------------

def prepare_params(params, *, storage_dtype=jnp.float32):
    """Preprocess weights/tables into kernel layouts.

    storage_dtype=jnp.bfloat16 halves the dominant HBM stream on this
    bandwidth-bound op (accumulation stays f32 in the kernel); kept f32 by
    default so the strict check against the f32 reference passes.
    In production keep only the table variant used by the deployed path.
    """
    E = params["fc0_b"].shape[0]
    w1 = params["fc0_w"].astype(storage_dtype)            # (E, 2E) torch (out, in)
    user_tab = params["user_emb"].astype(storage_dtype)   # (n_users, E) row-major
    item_tab = params["item_emb"].astype(storage_dtype)   # (n_items, E)

    def _pad_rows(t):
        n = t.shape[0]
        n_pad = max(128, pl.cdiv(n, 128) * 128)
        return jnp.pad(t, ((0, n_pad - n), (0, 0)))

    return {
        "E": E,
        # Row-major tables for the XLA fallback gather (contiguous 64 B rows).
        "user_tab": user_tab,
        "item_tab": item_tab,
        # Pre-transposed, row-padded tables for the VMEM-resident fused path.
        "user_tab_t": jnp.transpose(_pad_rows(user_tab)),          # (E, n_users_pad)
        "item_tab_t": jnp.transpose(_pad_rows(item_tab)),          # (E, n_items_pad)
        "w1u": w1[:, :E],                                          # v.T = w1u@u.T + w1i@i.T + b1
        "w1i": w1[:, E:],
        "b1_col": params["fc0_b"].reshape(E, 1).astype(jnp.float32),
        "neg_ws_col": -params["sum_w"].reshape(E, 1).astype(jnp.float32),
        "neg_bs": -params["sum_b"].reshape(1, 1).astype(jnp.float32),
    }


# ---------------------------------------------------------------------------
# Forward wrapper
# ---------------------------------------------------------------------------

def sdp_forward(uids, iids, prep, *, tb=8192, min_grid_steps=4, use_fused=None,
                fused_max_rows=1024, fused_tb=4096):
    E = prep["E"]
    B = uids.shape[0]
    n_up = prep["user_tab_t"].shape[1]
    n_ip = prep["item_tab_t"].shape[1]

    if use_fused is None:
        # VMEM budget for the fused path: resident tables + (n_pad, TB) one-hot
        # operands must leave room for pipeline buffers (v7x: 64 MiB physical
        # per TC, 32 MiB scoped default).  Large catalogs use the fallback.
        use_fused = (n_up + n_ip) <= fused_max_rows
    if use_fused:
        tb = min(tb, fused_tb)   # bound the (n_pad, TB) one-hot VMEM footprint

    # Batch tile (lane width): multiple of 128; keep the grid >= min_grid_steps
    # when the batch allows it so v7x's two TensorCores both get work and the
    # input pipeline has iterations to overlap.
    tb = max(128, min(tb, pl.cdiv(pl.cdiv(B, min_grid_steps), 128) * 128))
    b_pad = pl.cdiv(B, tb) * tb
    pad = b_pad - B
    uids_p = jnp.pad(uids.astype(jnp.int32), (0, pad))   # pad ids stay in range (row 0)
    iids_p = jnp.pad(iids.astype(jnp.int32), (0, pad))
    grid = (b_pad // tb,)

    weight_specs = [
        pl.BlockSpec((E, E), lambda i: (0, 0)),             # W1[:, :E], VMEM resident
        pl.BlockSpec((E, E), lambda i: (0, 0)),             # W1[:, E:], VMEM resident
        pl.BlockSpec((E, 1), lambda i: (0, 0)),             # b1 column
        pl.BlockSpec((E, 1), lambda i: (0, 0)),             # -Ws column
        pl.BlockSpec(memory_space=pltpu.MemorySpace.SMEM),  # -bs scalar
    ]
    weight_args = (prep["w1u"], prep["w1i"], prep["b1_col"],
                   prep["neg_ws_col"], prep["neg_bs"])
    out_spec = pl.BlockSpec((1, tb), lambda i: (0, i))      # lane-dense score row

    tab_itemsize = prep["user_tab_t"].dtype.itemsize
    if use_fused:
        kernel = sdp_fused_kernel
        data_args = (uids_p.reshape(1, b_pad), iids_p.reshape(1, b_pad),
                     prep["user_tab_t"], prep["item_tab_t"])
        data_specs = [
            pl.BlockSpec((1, tb), lambda i: (0, i)),            # user ids (tiny)
            pl.BlockSpec((1, tb), lambda i: (0, i)),            # item ids (tiny)
            pl.BlockSpec((E, n_up), lambda i: (0, 0)),          # user table, resident
            pl.BlockSpec((E, n_ip), lambda i: (0, 0)),          # item table, resident
        ]
        vmem_est = ((n_up + n_ip) * (E + tb) * tab_itemsize     # tables + one-hots
                    + 2 * 2 * tb * 4 + 2 * tb * 4 + (2 << 20))  # id/out tiles + slack
    else:
        # XLA row gather (contiguous per-id reads); kernel absorbs the transpose.
        kernel = sdp_gathered_kernel
        u_rows = jnp.take(prep["user_tab"], uids_p, axis=0)     # (b_pad, E)
        i_rows = jnp.take(prep["item_tab"], iids_p, axis=0)     # (b_pad, E)
        data_args = (u_rows, i_rows)
        data_specs = [
            pl.BlockSpec((tb, E), lambda i: (i, 0)),
            pl.BlockSpec((tb, E), lambda i: (i, 0)),
        ]
        # (TB, E) blocks lane-pad to 128 in VMEM; budget the double-buffered pair.
        vmem_est = 2 * 2 * tb * 128 * tab_itemsize + 2 * tb * 4 + (2 << 20)

    vmem_limit = int(min(max(vmem_est, 32 * 1024 * 1024), 48 * 1024 * 1024))

    out = pl.pallas_call(
        kernel,
        out_shape=jax.ShapeDtypeStruct((1, b_pad), jnp.float32),
        grid=grid,
        in_specs=list(data_specs) + weight_specs,
        out_specs=out_spec,
        compiler_params=pltpu.CompilerParams(
            dimension_semantics=("parallel",),
            vmem_limit_bytes=vmem_limit),
    )(*data_args, *weight_args)

    return out[0, :B].reshape(B, 1)


# ---------------------------------------------------------------------------
# Parameter init (mirrors SDP._reset_weights) and pure-JAX reference
# ---------------------------------------------------------------------------

def init_params(key, n_users, n_items, embedding_size):
    E = embedding_size
    k_u, k_i, k_b1, k_ws, k_bs = jax.random.split(key, 5)
    PADDING_IDX = 0

    user_emb = jax.random.normal(k_u, (n_users, E), jnp.float32) * (1.0 / E)
    user_emb = user_emb.at[PADDING_IDX].set(0.0)
    item_emb = jax.random.normal(k_i, (n_items, E), jnp.float32) * (1.0 / E)
    item_emb = item_emb.at[PADDING_IDX].set(0.0)

    # First FC weight is [I, -I] per _reset_weights (shape (E, 2E)).
    eye = jnp.eye(E, dtype=jnp.float32)
    fc0_w = jnp.concatenate([eye, -eye], axis=1)
    bnd1 = 1.0 / jnp.sqrt(2.0 * E)
    fc0_b = jax.random.uniform(k_b1, (E,), jnp.float32, -bnd1, bnd1)

    # sum_func: lecun_uniform weight init, default Linear bias init.
    lim = jnp.sqrt(3.0 / E)
    sum_w = jax.random.uniform(k_ws, (1, E), jnp.float32, -lim, lim)
    bnd2 = 1.0 / jnp.sqrt(float(E))
    sum_b = jax.random.uniform(k_bs, (1,), jnp.float32, -bnd2, bnd2)

    return {"user_emb": user_emb, "item_emb": item_emb,
            "fc0_w": fc0_w, "fc0_b": fc0_b,
            "sum_w": sum_w, "sum_b": sum_b}


def sdp_reference(uids, iids, params):
    u = params["user_emb"][uids]
    it = params["item_emb"][iids]
    v = jnp.concatenate([u, it], axis=1)
    v = v @ params["fc0_w"].T + params["fc0_b"]
    v = jnp.abs(v)
    s = v @ params["sum_w"].T + params["sum_b"]
    return -s


if __name__ == "__main__":
    n_users, n_items, E, B = 32, 40, 16, 8
    key = jax.random.PRNGKey(0)
    k_params, k_u, k_i = jax.random.split(key, 3)

    params = init_params(k_params, n_users, n_items, E)
    uids = jax.random.randint(k_u, (B,), 0, n_users, dtype=jnp.int32)
    iids = jax.random.randint(k_i, (B,), 0, n_items, dtype=jnp.int32)
    ref = sdp_reference(uids, iids, params)

    # 1) f32 storage, XLA row-gather fallback path (strict precision check).
    prep32 = prepare_params(params)
    out_gathered = jax.block_until_ready(
        sdp_forward(uids, iids, prep32, use_fused=False))
    assert out_gathered.shape == (B, 1) and out_gathered.dtype == jnp.float32
    assert jnp.allclose(out_gathered, ref, atol=1e-3, rtol=1e-3), (out_gathered, ref)

    # 2) f32 storage, fused in-kernel gather (tables VMEM-resident for this small
    #    catalog).  The MXU one-hot gather runs at default (reduced) matmul
    #    precision, hence a looser tolerance.
    out_fused = jax.block_until_ready(sdp_forward(uids, iids, prep32))
    assert out_fused.shape == (B, 1)
    assert jnp.allclose(out_fused, ref, atol=5e-2, rtol=5e-2), (out_fused, ref)

    # 3) bf16 table/weight storage (halves the dominant HBM stream), fallback path.
    prep16 = prepare_params(params, storage_dtype=jnp.bfloat16)
    out_bf16 = jax.block_until_ready(
        sdp_forward(uids, iids, prep16, use_fused=False))
    assert out_bf16.shape == (B, 1)
    assert jnp.allclose(out_bf16, ref, atol=5e-2, rtol=5e-2), (out_bf16, ref)

    print("KERNEL_OK")
</pallas_src>

<mosaic_0001>
module attributes {stable_mosaic.version = 11 : i64} {
  func.func @sdp_gathered_kernel(%arg0: i32, %arg1: memref<128x16xf32, #tpu.memory_space<vmem>>, %arg2: memref<128x16xf32, #tpu.memory_space<vmem>>, %arg3: memref<16x16xf32, #tpu.memory_space<vmem>>, %arg4: memref<16x16xf32, #tpu.memory_space<vmem>>, %arg5: memref<16x1xf32, #tpu.memory_space<vmem>>, %arg6: memref<16x1xf32, #tpu.memory_space<vmem>>, %arg7: memref<1x1xf32, #tpu.memory_space<smem>>, %arg8: memref<1x128xf32, #tpu.memory_space<vmem>>) attributes {dimension_semantics = [#tpu.dimension_semantics<parallel>], iteration_bounds = array<i64: 1>, scalar_prefetch = 0 : i64, scratch_operands = 0 : i64, tpu.core_type = #tpu.core_type<tc>, window_params = [{transform_indices = @transform_0, window_bounds = array<i64: 128, 16>}, {transform_indices = @transform_1, window_bounds = array<i64: 128, 16>}, {pipeline_mode = #tpu.pipeline_mode<synchronous>, transform_indices = @transform_2, window_bounds = array<i64: 16, 16>}, {pipeline_mode = #tpu.pipeline_mode<synchronous>, transform_indices = @transform_3, window_bounds = array<i64: 16, 16>}, {pipeline_mode = #tpu.pipeline_mode<synchronous>, transform_indices = @transform_4, window_bounds = array<i64: 16, 1>}, {pipeline_mode = #tpu.pipeline_mode<synchronous>, transform_indices = @transform_5, window_bounds = array<i64: 16, 1>}, {transform_indices = @transform_6, window_bounds = array<i64: 1, 1>}, {transform_indices = @transform_7, window_bounds = array<i64: 1, 128>}]} {
    %c0 = arith.constant 0 : index
    %c0_0 = arith.constant 0 : index
    %0 = vector.load %arg3[%c0, %c0_0] : memref<16x16xf32, #tpu.memory_space<vmem>>, vector<16x16xf32>
    %c0_1 = arith.constant 0 : index
    %c0_2 = arith.constant 0 : index
    %1 = vector.load %arg1[%c0_1, %c0_2] : memref<128x16xf32, #tpu.memory_space<vmem>>, vector<128x16xf32>
    %cst = arith.constant dense<0.000000e+00> : vector<16x128xf32>
    %2 = tpu.matmul %0, %1, %cst {dimension_numbers = #tpu.dot_dimension_numbers<[1], [1], [0], [0], [0, 0, 1, 0], [], []>} : vector<16x16xf32>, vector<128x16xf32>, vector<16x128xf32> -> vector<16x128xf32>
    %c0_3 = arith.constant 0 : index
    %c0_4 = arith.constant 0 : index
    %3 = vector.load %arg4[%c0_3, %c0_4] : memref<16x16xf32, #tpu.memory_space<vmem>>, vector<16x16xf32>
    %c0_5 = arith.constant 0 : index
    %c0_6 = arith.constant 0 : index
    %4 = vector.load %arg2[%c0_5, %c0_6] : memref<128x16xf32, #tpu.memory_space<vmem>>, vector<128x16xf32>
    %cst_7 = arith.constant dense<0.000000e+00> : vector<16x128xf32>
    %5 = tpu.matmul %3, %4, %cst_7 {dimension_numbers = #tpu.dot_dimension_numbers<[1], [1], [0], [0], [0, 0, 1, 0], [], []>} : vector<16x16xf32>, vector<128x16xf32>, vector<16x128xf32> -> vector<16x128xf32>
    %6 = arith.addf %2, %5 : vector<16x128xf32>
    %c0_8 = arith.constant 0 : index
    %c0_9 = arith.constant 0 : index
    %7 = vector.load %arg5[%c0_8, %c0_9] : memref<16x1xf32, #tpu.memory_space<vmem>>, vector<16x1xf32>
    %8 = vector.broadcast %7 : vector<16x1xf32> to vector<16x128xf32>
    %9 = arith.addf %6, %8 : vector<16x128xf32>
    %10 = math.absf %9 : vector<16x128xf32>
    %c0_10 = arith.constant 0 : index
    %c0_11 = arith.constant 0 : index
    %11 = vector.load %arg6[%c0_10, %c0_11] : memref<16x1xf32, #tpu.memory_space<vmem>>, vector<16x1xf32>
    %12 = vector.broadcast %11 : vector<16x1xf32> to vector<16x128xf32>
    %13 = arith.mulf %10, %12 : vector<16x128xf32>
    %cst_12 = arith.constant dense<0.000000e+00> : vector<128xf32>
    %14 = vector.multi_reduction <add>, %13, %cst_12 [0] : vector<16x128xf32> to vector<128xf32>
    %15 = vector.shape_cast %14 : vector<128xf32> to vector<1x128xf32>
    %c0_13 = arith.constant 0 : index
    %c0_14 = arith.constant 0 : index
    %16 = memref.load %arg7[%c0_13, %c0_14] : memref<1x1xf32, #tpu.memory_space<smem>>
    %17 = vector.broadcast %16 : f32 to vector<1x128xf32>
    %18 = arith.addf %15, %17 : vector<1x128xf32>
    %c0_15 = arith.constant 0 : index
    %c0_16 = arith.constant 0 : index
    %19 = vector.load %arg8[%c0_15, %c0_16] : memref<1x128xf32, #tpu.memory_space<vmem>>, vector<1x128xf32>
    tpu.vector_store %arg8[%c0_15, %c0_16], %18 {strides = array<i32>} : memref<1x128xf32, #tpu.memory_space<vmem>>, vector<1x128xf32>,
    return
  }
  func.func @transform_0(%arg0: i32) -> (i32, i32) {
    %c0_i32 = arith.constant 0 : i32
    %c0_i32_0 = arith.constant 0 : i32
    return %arg0, %c0_i32 : i32, i32
  }
  func.func @transform_1(%arg0: i32) -> (i32, i32) {
    %c0_i32 = arith.constant 0 : i32
    %c0_i32_0 = arith.constant 0 : i32
    return %arg0, %c0_i32 : i32, i32
  }
  func.func @transform_2(%arg0: i32) -> (i32, i32) {
    %c0_i32 = arith.constant 0 : i32
    %c0_i32_0 = arith.constant 0 : i32
    %c0_i32_1 = arith.constant 0 : i32
    return %c0_i32, %c0_i32_0 : i32, i32
  }
  func.func @transform_3(%arg0: i32) -> (i32, i32) {
    %c0_i32 = arith.constant 0 : i32
    %c0_i32_0 = arith.constant 0 : i32
    %c0_i32_1 = arith.constant 0 : i32
    return %c0_i32, %c0_i32_0 : i32, i32
  }
  func.func @transform_4(%arg0: i32) -> (i32, i32) {
    %c0_i32 = arith.constant 0 : i32
    %c0_i32_0 = arith.constant 0 : i32
    %c0_i32_1 = arith.constant 0 : i32
    return %c0_i32, %c0_i32_0 : i32, i32
  }
  func.func @transform_5(%arg0: i32) -> (i32, i32) {
    %c0_i32 = arith.constant 0 : i32
    %c0_i32_0 = arith.constant 0 : i32
    %c0_i32_1 = arith.constant 0 : i32
    return %c0_i32, %c0_i32_0 : i32, i32
  }
  func.func @transform_6(%arg0: i32) -> (i32, i32) {
    %c0_i32 = arith.constant 0 : i32
    %c0_i32_0 = arith.constant 0 : i32
    %c0_i32_1 = arith.constant 0 : i32
    return %c0_i32, %c0_i32_0 : i32, i32
  }
  func.func @transform_7(%arg0: i32) -> (i32, i32) {
    %c0_i32 = arith.constant 0 : i32
    %c0_i32_0 = arith.constant 0 : i32
    return %c0_i32, %arg0 : i32, i32
  }
}

</mosaic_0001>

<bundles_post_ra>
// kernel: tpu_custom_call.1
= control target key start
LH: loop header
LB: loop body
LE: loop exit
PB: predicated region body
PF: predicated region fallthrough
CT: control target
= control target key end

     0   :  { %vm64_vm0 = vcmask 130048   ;;  %v646_v7 = vmov 0   ;;  %s897_s0 = inlined_call_operand.vmem [shape: f32[128,16], index: 0, kind: input, shape index: {}]   ;;  %s898_s1 = inlined_call_operand.vmem [shape: f32[128,16], index: 1, kind: input, shape index: {}]   ;;  %s899_s2 = inlined_call_operand.vmem [shape: f32[16,16], index: 2, kind: input, shape index: {}]   ;;  %s900_s3 = inlined_call_operand.vmem [shape: f32[16,16], index: 3, kind: input, shape index: {}]   ;;  %s901_s4 = inlined_call_operand.vmem [shape: f32[16,1], index: 4, kind: input, shape index: {}]   ;;  %s902_s5 = inlined_call_operand.vmem [shape: f32[16,1], index: 5, kind: input, shape index: {}]   ;;  %s903_s6 = inlined_call_operand.<no memory space> [shape: f32[1,1], index: 6, kind: input, shape index: {}]   ;;  %s904_s7 = inlined_call_operand.hbm [shape: f32[1,128], index: 7, kind: output, shape index: {}]  }
   0x1   :  { %v48_v0 = vld [vmem:[%s898_s1] sm:$0xff]  ;;  %v49_v1 = vld [vmem:[%s898_s1 + $0x8] sm:$0xff]  ;;  %vm699_vm1 = vmpackc.low %vm64_vm0, %vm64_vm0  ;;  %620 = vset.pattern.permute.xlu0 %v646_v7  ;;  %621 = vset.pattern.permute.xlu1 %v646_v7 }
   0x2   :  { %v30_v2 = vld [vmem:[%s897_s0] sm:$0xff]  ;;  %v520_v3 = vpack.c.bf16 %v49_v1, %v48_v0  ;;  %v31_v5 = vld [vmem:[%s897_s0 + $0x8] sm:$0xff]  ;;  %v50_v6 = vld [vmem:[%s898_s1 + $0x10] sm:$0xff] }
   0x3   :  { %v568_v8 = vpack.c.bf16 %v31_v5, %v30_v2  ;;  %v51_v9 = vld [vmem:[%s898_s1 + $0x18] sm:$0xff]  ;;  %v32_v10 = vld [vmem:[%s897_s0 + $0x10] sm:$0xff]  ;;  %v52_v14 = vld [vmem:[%s898_s1 + $0x20] sm:$0xff] }
   0x4   :  { %v33_v11 = vld [vmem:[%s897_s0 + $0x18] sm:$0xff]  ;;  %522 = vmatprep.subr.msk.bf16.mxu1 %vm699_vm1, %v520_v3  ;;  %v526_v12 = vpack.c.bf16 %v51_v9, %v50_v6  ;;  %v53_v15 = vld [vmem:[%s898_s1 + $0x28] sm:$0xff]  ;;  %v34_v16 = vld [vmem:[%s897_s0 + $0x20] sm:$0xff] }
   0x5   :  { %v574_v13 = vpack.c.bf16 %v33_v11, %v32_v10  ;;  %570 = vmatprep.subr.msk.bf16.mxu0 %vm699_vm1, %v568_v8  ;;  %525 = vmatpush3.bf16.xpose.msk.msra.mxu1 %vm699_vm1, %v520_v3  ;;  %v35_v17 = vld [vmem:[%s897_s0 + $0x28] sm:$0xff]  ;;  %v532_v18 = vpack.c.bf16 %v53_v15, %v52_v14  ;;  %v46_v20 = vld [vmem:[%s900_s3] sm:$0xff] }
   0x6   :  { %573 = vmatpush3.bf16.xpose.msk.msra.mxu0 %vm699_vm1, %v568_v8  ;;  %528 = vmatprep.subr.msk.bf16.mxu1 %vm699_vm1, %v526_v12  ;;  %v580_v19 = vpack.c.bf16 %v35_v17, %v34_v16  ;;  %v28_v21 = vld [vmem:[%s899_s2] sm:$0xff] }
   0x7   :  { %576 = vmatprep.subr.msk.bf16.mxu0 %vm699_vm1, %v574_v13  ;;  %482 = vmatprep.mubr.msk.f32.mxu1 %vm64_vm0, %v46_v20  ;;  %v323_v22 = vld [vmem:[%s901_s4] sm:$0xff] }
   0x8   :  { %v339_v23 = vld [vmem:[%s902_s5] sm:$0xff] }
   0xd   :  { %531 = vmatpush3.bf16.xpose.msk.msra.mxu1 %vm699_vm1, %v526_v12 }
   0xe   :  { %579 = vmatpush3.bf16.xpose.msk.msra.mxu0 %vm699_vm1, %v574_v13  ;;  %534 = vmatprep.subr.msk.bf16.mxu1 %vm699_vm1, %v532_v18 }
   0xf   :  { %13 = vsyncpa [#allocation4], 0  ;;  %582 = vmatprep.subr.msk.bf16.mxu0 %vm699_vm1, %v580_v19  ;;  %v54_v24 = vld [vmem:[%s898_s1 + $0x30] sm:$0xff]  ;;  %v55_v25 = vld [vmem:[%s898_s1 + $0x38] sm:$0xff]  ;;  %517 = vmatprep.mubr.msk.f32.mxu0 %vm64_vm0, %v28_v21  ;;  %v361_v16 = vstv %s903_s6  ;;  %s647_s29 = smov [#allocation3]  }
  0x10   :  { %v36_v26 = vld [vmem:[%s897_s0 + $0x30] sm:$0xff]  ;;  %v37_v27 = vld [vmem:[%s897_s0 + $0x38] sm:$0xff]  ;;  %327 = vperm.xlu0 %620, %v323_v22   ;;  %343 = vperm.xlu1 %621, %v339_v23   ;;  %v324_v28 = vld [vmem:[%s901_s4 + $0x8] sm:$0xff]  ;;  %v538_v30 = vpack.c.bf16 %v55_v25, %v54_v24  ;;  %s370_s30 = sshll.u32 %s647_s29, 4  ;;  %s371_s30 = int_to_ptr.vmem [resolvable:$true] %s370_s30 }
  0x11   :  { %v340_v29 = vld [vmem:[%s902_s5 + $0x8] sm:$0xff]  ;;  %v586_v31 = vpack.c.bf16 %v37_v27, %v36_v26  ;;  %v56_v32 = vld [vmem:[%s898_s1 + $0x40] sm:$0xff]  ;;  %v58_v38 = vld [vmem:[%s898_s1 + $0x50] sm:$0xff]  ;;  %s622_s8 = scalar_lea.vmem %s371_s30, 16  ;;  %s626_s9 = scalar_lea.vmem %s371_s30, 32 }
  0x12   :  { %v57_v33 = vld [vmem:[%s898_s1 + $0x48] sm:$0xff]  ;;  %v38_v34 = vld [vmem:[%s897_s0 + $0x40] sm:$0xff]  ;;  %v59_v39 = vld [vmem:[%s898_s1 + $0x58] sm:$0xff]  ;;  %p623_p0 = scmp.ne.s32.totalorder %s371_s30, %s622_s8  ;;  %p627_p1 = scmp.lt.s32.totalorder %s371_s30, %s371_s30 }
  0x13   :  { %v39_v35 = vld [vmem:[%s897_s0 + $0x48] sm:$0xff]  ;;  %v544_v36 = vpack.c.bf16 %v57_v33, %v56_v32  ;;  %v40_v40 = vld [vmem:[%s897_s0 + $0x50] sm:$0xff]  ;;  %v41_v41 = vld [vmem:[%s897_s0 + $0x58] sm:$0xff]  ;;  %v550_v42 = vpack.c.bf16 %v59_v39, %v58_v38  ;;  %p628_p2 = scmp.lt.s32.totalorder %s626_s9, %s622_s8 }
  0x14   :  { %332 = vperm.xlu0 %620, %v324_v28   ;;  %348 = vperm.xlu1 %621, %v340_v29   ;;  %v592_v37 = vpack.c.bf16 %v39_v35, %v38_v34  ;;  %v598_v43 = vpack.c.bf16 %v41_v41, %v40_v40  ;;  %v60_v44 = vld [vmem:[%s898_s1 + $0x60] sm:$0xff]  ;;  %v61_v45 = vld [vmem:[%s898_s1 + $0x68] sm:$0xff]  ;;  %v62_v50 = vld [vmem:[%s898_s1 + $0x70] sm:$0xff] }
  0x15   :  { %537 = vmatpush3.bf16.xpose.msk.msra.mxu1 %vm699_vm1, %v532_v18  ;;  %v42_v46 = vld [vmem:[%s897_s0 + $0x60] sm:$0xff]  ;;  %v43_v47 = vld [vmem:[%s897_s0 + $0x68] sm:$0xff]  ;;  %v556_v48 = vpack.c.bf16 %v61_v45, %v60_v44  ;;  %v63_v51 = vld [vmem:[%s898_s1 + $0x78] sm:$0xff]  ;;  %p629_p3 = por %p628_p2, %p627_p1 }
  0x16   :  { %585 = vmatpush3.bf16.xpose.msk.msra.mxu0 %vm699_vm1, %v580_v19  ;;  %540 = vmatprep.subr.msk.bf16.mxu1 %vm699_vm1, %v538_v30  ;;  %v604_v49 = vpack.c.bf16 %v43_v47, %v42_v46  ;;  %v44_v52 = vld [vmem:[%s897_s0 + $0x70] sm:$0xff]  ;;  %v45_v53 = vld [vmem:[%s897_s0 + $0x78] sm:$0xff]  ;;  %v562_v54 = vpack.c.bf16 %v63_v51, %v62_v50  ;;  %v47_v56 = vld [vmem:[%s900_s3 + $0x8] sm:$0xff] }
  0x17   :  { %588 = vmatprep.subr.msk.bf16.mxu0 %vm699_vm1, %v586_v31  ;;  %v610_v55 = vpack.c.bf16 %v45_v53, %v44_v52  ;;  %v29_v57 = vld [vmem:[%s899_s2 + $0x8] sm:$0xff]  ;;  %p630_p4 = pnand %p629_p3, %p623_p0 }
  0x1d   :  { %543 = vmatpush3.bf16.xpose.msk.msra.mxu1 %vm699_vm1, %v538_v30 }
  0x1e   :  { %591 = vmatpush3.bf16.xpose.msk.msra.mxu0 %vm699_vm1, %v586_v31  ;;  %546 = vmatprep.subr.msk.bf16.mxu1 %vm699_vm1, %v544_v36 }
  0x1f   :  { %594 = vmatprep.subr.msk.bf16.mxu0 %vm699_vm1, %v592_v37 }
  0x25   :  { %549 = vmatpush3.bf16.xpose.msk.msra.mxu1 %vm699_vm1, %v544_v36 }
  0x26   :  { %597 = vmatpush3.bf16.xpose.msk.msra.mxu0 %vm699_vm1, %v592_v37  ;;  %552 = vmatprep.subr.msk.bf16.mxu1 %vm699_vm1, %v550_v42 }
  0x27   :  { %600 = vmatprep.subr.msk.bf16.mxu0 %vm699_vm1, %v598_v43 }
  0x2d   :  { %555 = vmatpush3.bf16.xpose.msk.msra.mxu1 %vm699_vm1, %v550_v42 }
  0x2e   :  { %603 = vmatpush3.bf16.xpose.msk.msra.mxu0 %vm699_vm1, %v598_v43  ;;  %558 = vmatprep.subr.msk.bf16.mxu1 %vm699_vm1, %v556_v48 }
  0x2f   :  { %606 = vmatprep.subr.msk.bf16.mxu0 %vm699_vm1, %v604_v49 }
  0x35   :  { %561 = vmatpush3.bf16.xpose.msk.msra.mxu1 %vm699_vm1, %v556_v48 }
  0x36   :  { %609 = vmatpush3.bf16.xpose.msk.msra.mxu0 %vm699_vm1, %v604_v49  ;;  %564 = vmatprep.subr.msk.bf16.mxu1 %vm699_vm1, %v562_v54 }
  0x37   :  { %612 = vmatprep.subr.msk.bf16.mxu0 %vm699_vm1, %v610_v55 }
  0x3d   :  { %567 = vmatpush3.bf16.xpose.msk.msra.mxu1 %vm699_vm1, %v562_v54 }
  0x3e   :  { %615 = vmatpush3.bf16.xpose.msk.msra.mxu0 %vm699_vm1, %v610_v55 }
  0x44   :  { %483 = vmatmul.mubr.msk.f32.vlgmr.msra.gmra.mrb[0].mxu1 %vm64_vm0, %v47_v56 }
  0x45   :  { %518 = vmatmul.mubr.msk.f32.vlgmr.msra.gmra.mrb[0].mxu0 %vm64_vm0, %v29_v57 }
  0x8f   :  { %v328_v58 = vpop.permute.xlu0 %327  ;;  %v344_v59 = vpop.permute.xlu1 %343 }
  0x93   :  { %v333_v1 = vpop.permute.xlu0 %332  ;;  %v349_v7 = vpop.permute.xlu1 %348 }
 0x117   :  { %v484_v60 = vpop.f32.mrb[0].mxu1 }
 0x118   :  { %v519_v61 = vpop.f32.mrb[0].mxu0  ;;  %v185_v62 = vpop.f32.mrb[1].mxu1 }
 0x119   :  { %v320_v63 = vadd.f32 %v519_v61, %v484_v60  ;;  %v314_v0 = vpop.f32.mrb[1].mxu0 }
 0x11a   :  { %v315_v2 = vadd.f32 %v314_v0, %v185_v62 }
 0x11b   :  { %v336_v3 = vadd.f32 %v333_v1, %v320_v63 }
 0x11c   :  { %v335_v4 = vadd.f32 %v328_v58, %v315_v2 }
 0x11d   :  { %v338_v5 = vand.u32 2147483647, %v336_v3 }
 0x11e   :  { %v337_v6 = vand.u32 2147483647, %v335_v4 }
 0x11f   :  { %v352_v8 = vmul.f32 %v349_v7, %v338_v5 }
 0x120   :  { %v351_v9 = vmul.f32 %v344_v59, %v337_v6 }
 0x122   :  { %v353_v10 = vadd.f32 %v352_v8, %v351_v9 }
 0x124   :  { %v354_v11 = vrot.slane %v353_v10, 4 }
 0x126   :  { %v355_v12 = vadd.f32 %v354_v11, %v353_v10 }
 0x128   :  { %v356_v13 = vrot.slane %v355_v12, 2 }
 0x12a   :  { %v357_v14 = vadd.f32 %v356_v13, %v355_v12 }
 0x12c   :  { %v358_v15 = vrot.slane %v357_v14, 1 }
 0x12e   :  { %v359_v17 = vadd.f32 %v358_v15, %v357_v14 }
 0x130   :  { %v362_v18 = vadd.f32 %v361_v16, %v359_v17 }
 0x132   :  { %363 = vst [vmem:[#allocation3] sm:$0x1] %v362_v18 }
 0x133   :  { %633 = shalt.err (!%p630_p4)
}
 0x134   :  { %s634_s12 = scalar_lea.hbm %s904_s7, 16 }
 0x135   :  { %p635_p5 = scmp.ne.s32.totalorder %s904_s7, %s634_s12  ;;  %p638_p6 = scmp.lt.u32.totalorder %s634_s12, %s904_s7 }
 0x137   :  { %p640_p7 = pnand %p638_p6, %p635_p5 }
 0x139   :  { %643 = shalt.err (!%p640_p7)
}
 0x13a   :  { %373 = dma.vmem_to_hbm [thread:$0]  %s371_s30, 16, %s904_s7, [#allocation4]  }
 0x13b   :  { %644 = dma.done.wait [#allocation4], 16  }
 0x13c   :  { %645 = vsyncadd [#allocation4], 4294967280 }
 0x13d   :  { %377 = vsyncpa [#allocation4], 1 }

</bundles_post_ra>
